<compile_context>
chip_gen: v7x
topology: tpu7x:2x2x1
jax: 0.10.0
libtpu: 0.0.40
codegen_flags: <defaults>
</compile_context>

<pallas_src>
import math

import jax
import jax.numpy as jnp
import numpy as np
from jax.experimental import pallas as pl
from jax.experimental.pallas import tpu as pltpu


_MAX_BLOCK_ROWS = 2048                 # 2048 x 512 f32 = 4 MiB per output block
_VMEM_CAP_BYTES = 48 * 1024 * 1024     # safe on v5e/v6e (128 MiB) and v7x (64 MiB)
_SEED_MIX = np.int32(-1640531527)      # 0x9E3779B9 as int32 (splitmix-style mix)


def _phi(x):
    """Standard normal CDF (host-side, static constants only)."""
    return 0.5 * (1.0 + math.erf(x / math.sqrt(2.0)))


def _trunc_consts(threshold):
    """Host-side constants for the truncated-normal inverse-CDF transform."""
    t = float(threshold)
    phi_lo = _phi(-t)
    span = _phi(t) - phi_lo
    c0 = 2.0 * phi_lo - 1.0                 # z = c0 + u*c1,  u in [0, 1)
    c1 = 2.0 * span
    z_max = max(abs(c0), abs(c0 + c1))
    w_max = -math.log(max(1.0 - z_max * z_max, 1e-38))
    need_tail = not (w_max < 5.0)           # statically dead for t <= ~2.9
    s2 = math.sqrt(2.0)                     # pre-scale coefficients by sqrt(2)
    central = tuple(s2 * c for c in (
        2.81022636e-08, 3.43273939e-07, -3.5233877e-06, -4.39150654e-06,
        0.00021858087, -0.00125372503, -0.00417768164, 0.246640727,
        1.50140941))
    tail = tuple(s2 * c for c in (
        -0.000200214257, 0.000100950558, 0.00134934322, -0.00367342844,
        0.00573950773, -0.0076224613, 0.00943887047, 1.00167406,
        2.83297682))
    return dict(t=t, c0=c0, c1=c1, need_tail=need_tail,
                central=central, tail=tail)


def _from_z(z, consts):
    """sqrt(2)*erfinv(z) via Giles (2010), coefficients pre-scaled by sqrt(2)."""
    t = consts["t"]
    one_minus_z2 = jnp.float32(1.0) - z * z
    if consts["need_tail"]:
        # Only needed when |z| can approach 1 (large thresholds): guard log(0).
        one_minus_z2 = jnp.maximum(one_minus_z2, jnp.float32(1e-38))
    w = -jnp.log(one_minus_z2)
    wc = w - jnp.float32(2.5)
    p = jnp.float32(consts["central"][0])
    for c in consts["central"][1:]:
        p = jnp.float32(c) + p * wc
    x = p * z
    if consts["need_tail"]:
        wt = jnp.sqrt(w) - jnp.float32(3.0)
        q = jnp.float32(consts["tail"][0])
        for c in consts["tail"][1:]:
            q = jnp.float32(c) + q * wt
        x = jnp.where(w < jnp.float32(5.0), x, q * z)
    # Hard guarantee of the truncation bound (numerical safety).
    return jnp.clip(x, -jnp.float32(t), jnp.float32(t))


def _make_hw_prng_kernel(consts, block_rows, cols):
    """TPU fast path: samples generated on-chip, no input traffic."""
    c0 = np.float32(consts["c0"])
    c1 = np.float32(consts["c1"] / float(1 << 23))   # fold 2^-23 uniform scale

    def kernel(seed_ref, o_ref):
        # Deterministic, decorrelated per-block seed (splitmix-style mixing).
        pltpu.prng_seed(seed_ref[0] + pl.program_id(0) * _SEED_MIX)
        raw = pltpu.prng_random_bits((block_rows, cols))
        bits = raw if raw.dtype == jnp.int32 else pltpu.bitcast(raw, jnp.int32)
        mant = bits & jnp.int32(0x7FFFFF)             # 23 random bits
        z = c0 + mant.astype(jnp.float32) * c1        # single fused affine
        o_ref[...] = _from_z(z, consts)

    return kernel


def _make_uniform_kernel(consts):
    """Portable path: uniforms are generated outside and streamed in."""
    c0 = np.float32(consts["c0"])
    c1 = np.float32(consts["c1"])

    def kernel(u_ref, o_ref):
        z = c0 + u_ref[...] * c1
        o_ref[...] = _from_z(z, consts)

    return kernel


def _choose_tiling(total):
    # Lane-dense output (multiple of 128 -> unmasked vst); prefer a width that
    # divides `total` exactly so the post-kernel trim is a free reshape.
    cols = 512
    for c in (512, 256, 128):
        if total % c == 0:
            cols = c
            break
    n_rows = -(-total // cols)
    if n_rows <= 8:
        block_rows = n_rows                      # single full-extent block
    else:
        block_rows = min(_MAX_BLOCK_ROWS, ((n_rows + 7) // 8) * 8)
        if n_rows >= 64:
            # Keep >= 2 grid steps so the "parallel" axis can shard across
            # v7x's two TensorCores (no effect on v5e/v6e).
            half = ((-(-n_rows // 2) + 7) // 8) * 8
            block_rows = min(block_rows, max(8, half))
    n_blocks = -(-n_rows // block_rows)
    return cols, block_rows, n_blocks


def truncated_norm(size, threshold=2.0, key=None):
    """Pallas equivalent of TruncatedNorm.forward(size, threshold).

    scipy's implicit global RNG state is replaced by an explicit JAX key.
    Returns float32 samples of shape `size`, truncated to [-threshold, threshold].
    """
    if isinstance(size, int):
        size = (size,)
    size = tuple(int(s) for s in size)
    total = int(np.prod(size))
    assert total > 0, "size must be non-empty"
    if key is None:
        key = jax.random.PRNGKey(0)

    consts = _trunc_consts(threshold)
    cols, block_rows, n_blocks = _choose_tiling(total)
    padded_rows = n_blocks * block_rows

    block_bytes = block_rows * cols * 4
    vmem_limit = min(_VMEM_CAP_BYTES, max(16 * 1024 * 1024, 12 * block_bytes))
    cparams = pltpu.CompilerParams(
        dimension_semantics=("parallel",),
        vmem_limit_bytes=vmem_limit,
    )
    out_shape = jax.ShapeDtypeStruct((padded_rows, cols), jnp.float32)

    if jax.default_backend() == "tpu":
        # Fast path: hardware PRNG inside the kernel -> zero input traffic.
        seed_arr = jax.random.randint(key, (1,), 0, np.iinfo(np.int32).max,
                                      dtype=jnp.int32)
        flat = pl.pallas_call(
            _make_hw_prng_kernel(consts, block_rows, cols),
            out_shape=out_shape,
            grid_spec=pltpu.PrefetchScalarGridSpec(
                num_scalar_prefetch=1,
                grid=(n_blocks,),
                in_specs=[],
                out_specs=pl.BlockSpec((block_rows, cols),
                                       lambda i, seed: (i, 0)),
            ),
            compiler_params=cparams,
        )(seed_arr)
    else:
        # Portable path (non-TPU / interpret): stream externally drawn uniforms.
        u = jax.random.uniform(key, (padded_rows, cols), dtype=jnp.float32)
        flat = pl.pallas_call(
            _make_uniform_kernel(consts),
            out_shape=out_shape,
            grid=(n_blocks,),
            in_specs=[pl.BlockSpec((block_rows, cols), lambda i: (i, 0))],
            out_specs=pl.BlockSpec((block_rows, cols), lambda i: (i, 0)),
            compiler_params=cparams,
        )(u)

    # For 128-aligned sizes padded_rows*cols == total, so this is a free reshape.
    return flat.reshape(-1)[:total].reshape(size)


if __name__ == "__main__":
    key = jax.random.PRNGKey(0)
    # Deterministic example: batch=2, seq=8, hidden=32 -> size=(2, 8, 32)
    size = (2, 8, 32)
    threshold = 2.0

    out = truncated_norm(size, threshold=threshold, key=key)
    out = jax.block_until_ready(out)

    assert out.shape == size, out.shape
    assert out.dtype == jnp.float32, out.dtype
    # Truncation bound is a hard guarantee of the module.
    assert bool(jnp.all(jnp.abs(out) <= threshold + 1e-5)), "values escaped bound"
    # Loose distributional sanity checks (truncnorm(-2, 2): mean 0, std ~0.88).
    mean = float(jnp.mean(out))
    std = float(jnp.std(out))
    assert abs(mean) < 0.25, f"mean off: {mean}"
    assert 0.6 < std < 1.05, f"std off: {std}"
    assert float(jnp.max(out) - jnp.min(out)) > 0.5, "degenerate samples"
    print("KERNEL_OK")
</pallas_src>

<mosaic_0001>
module attributes {stable_mosaic.version = 11 : i64} {
  func.func @kernel(%arg0: i32, %arg1: memref<1x512xf32, #tpu.memory_space<vmem>>, %arg2: memref<1x512xf32, #tpu.memory_space<vmem>>) attributes {dimension_semantics = [#tpu.dimension_semantics<parallel>], iteration_bounds = array<i64: 1>, scalar_prefetch = 0 : i64, scratch_operands = 0 : i64, tpu.core_type = #tpu.core_type<tc>, window_params = [{transform_indices = @transform_0, window_bounds = array<i64: 1, 512>}, {transform_indices = @transform_1, window_bounds = array<i64: 1, 512>}]} {
    %c0 = arith.constant 0 : index
    %c0_0 = arith.constant 0 : index
    %0 = vector.load %arg1[%c0, %c0_0] : memref<1x512xf32, #tpu.memory_space<vmem>>, vector<1x512xf32>
    %cst = arith.constant 1.90899944 : f32
    %1 = vector.broadcast %cst : f32 to vector<1x512xf32>
    %2 = arith.mulf %0, %1 : vector<1x512xf32>
    %cst_1 = arith.constant -0.954499721 : f32
    %3 = vector.broadcast %cst_1 : f32 to vector<1x512xf32>
    %4 = arith.addf %3, %2 : vector<1x512xf32>
    %5 = arith.mulf %4, %4 : vector<1x512xf32>
    %cst_2 = arith.constant 1.000000e+00 : f32
    %6 = vector.broadcast %cst_2 : f32 to vector<1x512xf32>
    %7 = arith.subf %6, %5 : vector<1x512xf32>
    %8 = math.log %7 : vector<1x512xf32>
    %cst_3 = arith.constant 0.000000e+00 : f32
    %9 = vector.broadcast %cst_3 : f32 to vector<1x512xf32>
    %10 = arith.subf %9, %8 : vector<1x512xf32>
    %cst_4 = arith.constant 2.500000e+00 : f32
    %11 = vector.broadcast %cst_4 : f32 to vector<1x512xf32>
    %12 = arith.subf %10, %11 : vector<1x512xf32>
    %cst_5 = arith.constant 3.97426021E-8 : f32
    %13 = vector.broadcast %cst_5 : f32 to vector<1x512xf32>
    %14 = arith.mulf %13, %12 : vector<1x512xf32>
    %cst_6 = arith.constant 4.85462635E-7 : f32
    %15 = vector.broadcast %cst_6 : f32 to vector<1x512xf32>
    %16 = arith.addf %15, %14 : vector<1x512xf32>
    %17 = arith.mulf %16, %12 : vector<1x512xf32>
    %cst_7 = arith.constant -4.9828227E-6 : f32
    %18 = vector.broadcast %cst_7 : f32 to vector<1x512xf32>
    %19 = arith.addf %18, %17 : vector<1x512xf32>
    %20 = arith.mulf %19, %12 : vector<1x512xf32>
    %cst_8 = arith.constant -6.21052823E-6 : f32
    %21 = vector.broadcast %cst_8 : f32 to vector<1x512xf32>
    %22 = arith.addf %21, %20 : vector<1x512xf32>
    %23 = arith.mulf %22, %12 : vector<1x512xf32>
    %cst_9 = arith.constant 3.0912002E-4 : f32
    %24 = vector.broadcast %cst_9 : f32 to vector<1x512xf32>
    %25 = arith.addf %24, %23 : vector<1x512xf32>
    %26 = arith.mulf %25, %12 : vector<1x512xf32>
    %cst_10 = arith.constant -0.00177303492 : f32
    %27 = vector.broadcast %cst_10 : f32 to vector<1x512xf32>
    %28 = arith.addf %27, %26 : vector<1x512xf32>
    %29 = arith.mulf %28, %12 : vector<1x512xf32>
    %cst_11 = arith.constant -0.00590813393 : f32
    %30 = vector.broadcast %cst_11 : f32 to vector<1x512xf32>
    %31 = arith.addf %30, %29 : vector<1x512xf32>
    %32 = arith.mulf %31, %12 : vector<1x512xf32>
    %cst_12 = arith.constant 0.348802656 : f32
    %33 = vector.broadcast %cst_12 : f32 to vector<1x512xf32>
    %34 = arith.addf %33, %32 : vector<1x512xf32>
    %35 = arith.mulf %34, %12 : vector<1x512xf32>
    %cst_13 = arith.constant 2.12331367 : f32
    %36 = vector.broadcast %cst_13 : f32 to vector<1x512xf32>
    %37 = arith.addf %36, %35 : vector<1x512xf32>
    %38 = arith.mulf %37, %4 : vector<1x512xf32>
    %cst_14 = arith.constant 0.000000e+00 : f32
    %cst_15 = arith.constant 2.000000e+00 : f32
    %39 = arith.subf %cst_14, %cst_15 : f32
    %cst_16 = arith.constant 2.000000e+00 : f32
    %40 = vector.broadcast %39 : f32 to vector<1x512xf32>
    %41 = arith.maximumf %40, %38 : vector<1x512xf32>
    %42 = vector.broadcast %cst_16 : f32 to vector<1x512xf32>
    %43 = arith.minimumf %42, %41 : vector<1x512xf32>
    %c0_17 = arith.constant 0 : index
    %c0_18 = arith.constant 0 : index
    %44 = vector.load %arg2[%c0_17, %c0_18] : memref<1x512xf32, #tpu.memory_space<vmem>>, vector<1x512xf32>
    tpu.vector_store %arg2[%c0_17, %c0_18], %43 {strides = array<i32>} : memref<1x512xf32, #tpu.memory_space<vmem>>, vector<1x512xf32>,
    return
  }
  func.func @transform_0(%arg0: i32) -> (i32, i32) {
    %c0_i32 = arith.constant 0 : i32
    %c0_i32_0 = arith.constant 0 : i32
    return %arg0, %c0_i32 : i32, i32
  }
  func.func @transform_1(%arg0: i32) -> (i32, i32) {
    %c0_i32 = arith.constant 0 : i32
    %c0_i32_0 = arith.constant 0 : i32
    return %arg0, %c0_i32 : i32, i32
  }
}

</mosaic_0001>

<bundles_post_ra>
// kernel: tpu_custom_call.1
= control target key start
LH: loop header
LB: loop body
LE: loop exit
PB: predicated region body
PF: predicated region fallthrough
CT: control target
= control target key end

     0   :  { %6 = vsyncpa [#allocation3], 0  ;;  %s159_s0 = inlined_call_operand.hbm [shape: f32[1,512], index: 0, kind: input, shape index: {}]   ;;  %s160_s1 = inlined_call_operand.hbm [shape: f32[1,512], index: 1, kind: output, shape index: {}]  }
   0x1   :  { %7 = vsyncpa [#allocation4], 0  ;;  %s123_s6 = smov [#allocation2]   ;;  %s75_s10 = scalar_lea.hbm %s159_s0, 64 }
   0x2   :  { %s14_s7 = sshll.u32 %s123_s6, 4  ;;  %p76_p0 = scmp.ne.s32.totalorder %s159_s0, %s75_s10  ;;  %s15_s7 = int_to_ptr.vmem [resolvable:$true] %s14_s7 }
   0x3   :  { %p79_p1 = scmp.lt.u32.totalorder %s75_s10, %s159_s0 }
   0x5   :  { %p81_p2 = pnand %p79_p1, %p76_p0 }
   0x7   :  { %84 = shalt.err (!%p81_p2)
}
   0x8   :  { %s85_s15 = scalar_lea.vmem %s15_s7, 64  ;;  %p90_p4 = scmp.lt.s32.totalorder %s15_s7, %s15_s7 }
   0x9   :  { %p86_p3 = scmp.ne.s32.totalorder %s15_s7, %s85_s15  ;;  %p91_p5 = scmp.lt.s32.totalorder %s85_s15, %s85_s15 }
   0xb   :  { %p92_p6 = por %p91_p5, %p90_p4 }
   0xd   :  { %p93_p7 = pnand %p92_p6, %p86_p3 }
   0xf   :  { %96 = shalt.err (!%p93_p7)
}
  0x10   :  { %17 = dma.hbm_to_vmem [thread:$0]  %s159_s0, 64, %s15_s7, [#allocation3]  }
  0x11   :  { %119 = dma.done.wait [#allocation3], 64  }
  0x12   :  { %120 = vsyncadd [#allocation3], 4294967232  ;;  %v21_v0 = vld [vmem:[#allocation2] sm:$0xf]  ;;  %v49_v24 = vlaneseq  ;;  %s124_s0 = smov [#allocation5]  }
  0x13   :  { %v22_v1 = vmul.f32 1.9089994, %v21_v0  ;;  %s60_s18 = sshll.u32 %s124_s0, 4  ;;  %s61_s18 = int_to_ptr.vmem [resolvable:$true] %s60_s18 }
  0x14   :  { %vm51_vm0 = vcmp.lt.s32.totalorder %v49_v24, 512  ;;  %s97_s19 = scalar_lea.vmem %s61_s18, 64  ;;  %p102_p9 = scmp.lt.s32.totalorder %s61_s18, %s61_s18 }
  0x15   :  { %v23_v2 = vadd.f32 -0.9544997, %v22_v1  ;;  %p98_p8 = scmp.ne.s32.totalorder %s61_s18, %s97_s19  ;;  %p103_p10 = scmp.lt.s32.totalorder %s97_s19, %s97_s19 }
  0x17   :  { %v24_v3 = vmul.f32 %v23_v2, %v23_v2  ;;  %p104_p11 = por %p103_p10, %p102_p9 }
  0x19   :  { %v25_v4 = vsub.f32 1.0, %v24_v3  ;;  %p105_p12 = pnand %p104_p11, %p98_p8 }
  0x1b   :  { %73 = vlog2.f32 %v25_v4 }
  0x25   :  { %v74_v5 = vpop.eup %73 }
  0x26   :  { %v27_v6 = vmul.f32 0.6931472, %v74_v5 }
  0x28   :  { %v28_v7 = vsub.f32 0.0, %v27_v6 }
  0x2a   :  { %v69_v8 = vadd.f32 -2.5, %v28_v7 }
  0x2c   :  { %v30_v9 = vmul.f32 3.9742602e-08, %v69_v8 }
  0x2e   :  { %v31_v10 = vadd.f32 4.8546264e-07, %v30_v9 }
  0x30   :  { %v32_v11 = vmul.f32 %v69_v8, %v31_v10 }
  0x32   :  { %v33_v12 = vadd.f32 -4.9828227e-06, %v32_v11 }
  0x34   :  { %v34_v13 = vmul.f32 %v69_v8, %v33_v12 }
  0x36   :  { %v35_v14 = vadd.f32 -6.210528e-06, %v34_v13 }
  0x38   :  { %v36_v15 = vmul.f32 %v69_v8, %v35_v14 }
  0x3a   :  { %v37_v16 = vadd.f32 0.00030912002, %v36_v15 }
  0x3c   :  { %v38_v17 = vmul.f32 %v69_v8, %v37_v16 }
  0x3e   :  { %v39_v18 = vadd.f32 -0.0017730349, %v38_v17 }
  0x40   :  { %v40_v19 = vmul.f32 %v69_v8, %v39_v18 }
  0x42   :  { %v41_v20 = vadd.f32 -0.005908134, %v40_v19 }
  0x44   :  { %v42_v21 = vmul.f32 %v69_v8, %v41_v20 }
  0x46   :  { %v43_v22 = vadd.f32 0.34880266, %v42_v21 }
  0x48   :  { %v44_v23 = vmul.f32 %v69_v8, %v43_v22 }
  0x4a   :  { %v45_v25 = vadd.f32 2.1233137, %v44_v23 }
  0x4c   :  { %v46_v26 = vmul.f32 %v45_v25, %v23_v2 }
  0x4e   :  { %v70_v27 = vclamps-f32 %v46_v26, 2.0 }
  0x50   :  { %53 = vst.msk [vmem:[#allocation5] sm:$0xf] %vm51_vm0, %v70_v27 }
  0x51   :  { %108 = shalt.err (!%p105_p12)
}
  0x52   :  { %s109_s22 = scalar_lea.hbm %s160_s1, 64 }
  0x53   :  { %p110_p13 = scmp.ne.s32.totalorder %s160_s1, %s109_s22  ;;  %p113_p0 = scmp.lt.u32.totalorder %s109_s22, %s160_s1 }
  0x55   :  { %p115_p1 = pnand %p113_p0, %p110_p13 }
  0x57   :  { %118 = shalt.err (!%p115_p1)
}
  0x58   :  { %63 = dma.vmem_to_hbm [thread:$0]  %s61_s18, 64, %s160_s1, [#allocation4]  }
  0x59   :  { %121 = dma.done.wait [#allocation4], 64  }
  0x5a   :  { %122 = vsyncadd [#allocation4], 4294967232 }
  0x5b   :  { %67 = vsyncpa [#allocation3], 1 }
  0x5c   :  { %68 = vsyncpa [#allocation4], 1 }

</bundles_post_ra>
